<compile_context>
chip_gen: v7x
topology: tpu7x:2x2x1
jax: 0.10.0
libtpu: 0.0.40
codegen_flags: <defaults>
</compile_context>

<pallas_src>
import numpy as np
import jax
import jax.numpy as jnp
from jax import lax
from jax.experimental import pallas as pl
from jax.experimental.pallas import tpu as pltpu

NEG_SLOPE = 0.01     # nn.LeakyReLU default
LN_EPS = 1e-5        # nn.LayerNorm default


def _layernorm(x, w, b):
    mu = jnp.mean(x, axis=-1, keepdims=True)
    d = x - mu
    var = jnp.mean(d * d, axis=-1, keepdims=True)
    return d * lax.rsqrt(var + LN_EPS) * w + b


def _leaky_relu(x):
    return jnp.where(x >= 0, x, NEG_SLOPE * x)


def make_tcn_kernel(num_layers, kernel_size, b_tile, t):
    def tcn_kernel(x_ref, w_in_ref, b_in_ref, lnin_w_ref, lnin_b_ref,
                   conv_w_ref, conv_b_ref, ln_w_ref, ln_b_ref,
                   gamma_ref, w_out_ref, b_out_ref, o_ref):
        # ----- input_proj: x_ref is already the flat (B_TILE*T, N) slab -----
        h = jnp.dot(x_ref[...], w_in_ref[...],
                    preferred_element_type=jnp.float32)
        h = h + b_in_ref[...]
        h = _layernorm(h, lnin_w_ref[...], lnin_b_ref[...])       # (B*T, H)

        # Hoisted causal masks: one boolean slab per *distinct* nonzero shift
        # (e.g. layers give {1,2},{2,4},{4,8} -> only {1,2,4,8}).  The mask both
        # enforces causal zero-padding and kills cross-batch leakage from
        # rolling the flat (B*T, H) slab.
        t_idx = lax.broadcasted_iota(jnp.int32, h.shape, 0) % t
        shifts = sorted({(2 ** l) * (kernel_size - 1 - k)
                         for l in range(num_layers)
                         for k in range(kernel_size)} - {0})
        masks = {s: t_idx >= s for s in shifts if s < t}

        # ----- TCN blocks -----
        for l in range(num_layers):
            d = 2 ** l
            residual = h
            wl = conv_w_ref[l]                                    # (K, H) taps
            # k = K-1 is the shift-0 tap: seed the accumulator with it plus the
            # conv bias (saves a zero-fill and a separate bias add per layer).
            conv = h * wl[kernel_size - 1:kernel_size, :] + conv_b_ref[l:l + 1, :]
            for k in range(kernel_size - 1):
                s = d * (kernel_size - 1 - k)                     # causal shift
                if s >= t:
                    continue                                      # fully outside window
                shifted = pltpu.roll(h, shift=s, axis=0)          # XLU sublane roll
                conv = conv + jnp.where(masks[s], shifted, 0.0) * wl[k:k + 1, :]
            y = _layernorm(conv, ln_w_ref[l:l + 1, :], ln_b_ref[l:l + 1, :])
            y = _leaky_relu(y)
            # TODO(synk): nn.Dropout(p=0.0) is the identity; no-op here.
            h = residual + gamma_ref[l:l + 1, :] * y

        # ----- leaky_relu + AdaptiveAvgPool1d(1) + batched output_proj -----
        h = _leaky_relu(h)
        # NOTE: with t a multiple of 8 this reshape is pure re-indexing; a
        # further step would offload the pool / LN reductions to the idle MXU.
        pooled = jnp.mean(h.reshape(b_tile, t, -1), axis=1)       # (B, H)
        out = jnp.dot(pooled, w_out_ref[...],
                      preferred_element_type=jnp.float32) + b_out_ref[...]
        o_ref[...] = out.astype(o_ref.dtype)                      # one (B, O) store
        # TODO(synk): torch.nn.utils.clip_grad_norm_ acts on gradients only;
        # it has no effect on the forward output and is not representable here.
        # NOTE: H=32 fills only 32/128 lanes and O=8 is a lane-sparse store;
        # for real deployments pick hidden_size (and, if it matters, the output
        # width) as multiples of 128, and consider bf16 activations on v6e/v7x.
    return tcn_kernel


def _pick_b_tile(bs, t, hidden):
    """Batch rows per grid step.

    Targets ~4K-8K sublane rows per tile (amortizing per-grid-step overhead),
    keeps grid >= 2 when possible so v7x can shard tiles across its two
    TensorCores, keeps blocks sublane-aligned (x8), and bounds the live-slab
    footprint so the tile fits v7x's 64 MiB VMEM with headroom.
    """
    row_budget = max(512, (24 << 20) // (16 * hidden * 4))
    target_rows = min(8192, row_budget)
    cap = max(1, min(bs // 2, target_rows // max(t, 1)))
    for cand in range(cap, 0, -1):
        if bs % cand == 0 and cand % 8 == 0:
            return cand
    return bs          # small / awkward batch: one grid step, full-extent blocks


def _vmem_limit_bytes(b_tile, t, n, hidden, out_dim, param_bytes):
    rows = b_tile * t
    slab = rows * hidden * 4
    est = (2 * rows * n * 4            # double-buffered input block
           + 2 * b_tile * out_dim * 4  # double-buffered output block
           + 2 * param_bytes           # weights/biases (conservatively x2)
           + 16 * slab                 # live activation slabs + masks + temps
           + (2 << 20))                # headroom
    return int(min(max(est, 16 << 20), 64 << 20))


def tcn_encoder_forward(x, params, num_layers=3, kernel_size=3, b_tile=None):
    bs, t, n = x.shape
    hidden = params["w_in"].shape[1]
    out_dim = params["w_out"].shape[1]
    if b_tile is None:
        b_tile = _pick_b_tile(bs, t, hidden)
    assert bs % b_tile == 0, "batch must be divisible by the batch tile"
    grid = (bs // b_tile,)

    # Flatten (B, T, N) -> (B*T, N) in the wrapper (cheap XLA reshape of a
    # contiguous array) so the kernel never reshapes its input slab.
    x_flat = x.reshape(bs * t, n)

    operands = (x_flat, params["w_in"], params["b_in"], params["lnin_w"],
                params["lnin_b"], params["conv_w"], params["conv_b"],
                params["ln_w"], params["ln_b"], params["gamma"],
                params["w_out"], params["b_out"])
    param_bytes = sum(int(op.size) * op.dtype.itemsize for op in operands[1:])

    def full_spec(shape):
        r = len(shape)
        return pl.BlockSpec(shape, lambda b, r=r: (0,) * r)

    in_specs = [pl.BlockSpec((b_tile * t, n), lambda b: (b, 0))]
    in_specs += [full_spec(op.shape) for op in operands[1:]]

    out = pl.pallas_call(
        make_tcn_kernel(num_layers, kernel_size, b_tile, t),
        out_shape=jax.ShapeDtypeStruct((bs, out_dim), jnp.float32),
        grid=grid,
        in_specs=in_specs,
        out_specs=pl.BlockSpec((b_tile, out_dim), lambda b: (b, 0)),
        compiler_params=pltpu.CompilerParams(
            dimension_semantics=("parallel",),   # batch tiles are independent
            vmem_limit_bytes=_vmem_limit_bytes(b_tile, t, n, hidden, out_dim,
                                               param_bytes)),
    )(*operands)
    return out                                                    # (bs, O)


def tcn_reference(x, params, num_layers=3, kernel_size=3):
    """Pure-JAX reference mirroring the torch forward."""
    h = x @ params["w_in"] + params["b_in"]
    h = _layernorm(h, params["lnin_w"], params["lnin_b"])
    for l in range(num_layers):
        d = 2 ** l
        residual = h
        conv = jnp.zeros_like(h)
        for k in range(kernel_size):
            s = d * (kernel_size - 1 - k)
            shifted = h if s == 0 else jnp.pad(
                h, ((0, 0), (s, 0), (0, 0)))[:, :h.shape[1], :]
            conv = conv + shifted * params["conv_w"][l, k][None, None, :]
        conv = conv + params["conv_b"][l][None, None, :]
        y = _layernorm(conv, params["ln_w"][l][None, None, :],
                       params["ln_b"][l][None, None, :])
        y = _leaky_relu(y)
        h = residual + params["gamma"][l][None, None, :] * y
    h = _leaky_relu(h)
    pooled = jnp.mean(h, axis=1)
    return pooled @ params["w_out"] + params["b_out"]


def init_params(key, input_size, hidden_size, output_size,
                num_layers=3, kernel_size=3):
    k0, k1, k2, k3 = jax.random.split(key, 4)
    b_in_proj = float(np.sqrt(6.0 / (input_size + hidden_size)))   # xavier_uniform
    b_out_proj = float(np.sqrt(6.0 / (hidden_size + output_size)))
    b_conv = float(np.sqrt(1.0 / kernel_size))                     # fan_in = K (depthwise)
    return {
        "w_in": jax.random.uniform(k0, (input_size, hidden_size), jnp.float32,
                                   -b_in_proj, b_in_proj),
        "b_in": jnp.zeros((1, hidden_size), jnp.float32),
        "lnin_w": jnp.ones((1, hidden_size), jnp.float32),
        "lnin_b": jnp.zeros((1, hidden_size), jnp.float32),
        "conv_w": jax.random.uniform(k1, (num_layers, kernel_size, hidden_size),
                                     jnp.float32, -b_conv, b_conv),
        "conv_b": jax.random.uniform(k2, (num_layers, hidden_size),
                                     jnp.float32, -b_conv, b_conv),
        "ln_w": jnp.ones((num_layers, hidden_size), jnp.float32),
        "ln_b": jnp.zeros((num_layers, hidden_size), jnp.float32),
        # gamma is a scalar per block in torch (init 1.0); stored replicated.
        "gamma": jnp.ones((num_layers, hidden_size), jnp.float32),
        "w_out": jax.random.uniform(k3, (hidden_size, output_size), jnp.float32,
                                    -b_out_proj, b_out_proj),
        "b_out": jnp.zeros((1, output_size), jnp.float32),
    }


if __name__ == "__main__":
    input_size, hidden_size, output_size = 8, 32, 8
    num_layers, kernel_size = 3, 3
    t = 16

    key = jax.random.PRNGKey(0)
    k_params, k_x1, k_x2 = jax.random.split(key, 3)
    params = init_params(k_params, input_size, hidden_size, output_size,
                         num_layers, kernel_size)

    # Single-tile case (bs=2 -> whole batch in one grid step).
    x1 = jax.random.normal(k_x1, (2, t, input_size), jnp.float32)
    out1 = jax.block_until_ready(
        tcn_encoder_forward(x1, params, num_layers, kernel_size))
    ref1 = jax.block_until_ready(
        tcn_reference(x1, params, num_layers, kernel_size))
    np.testing.assert_allclose(np.asarray(out1), np.asarray(ref1),
                               rtol=1e-3, atol=1e-3)
    assert out1.shape == (2, output_size)

    # Multi-tile case exercising the batch-tiled grid (bs=16 -> b_tile=8, grid=2).
    x2 = jax.random.normal(k_x2, (16, t, input_size), jnp.float32)
    out2 = jax.block_until_ready(
        tcn_encoder_forward(x2, params, num_layers, kernel_size))
    ref2 = jax.block_until_ready(
        tcn_reference(x2, params, num_layers, kernel_size))
    np.testing.assert_allclose(np.asarray(out2), np.asarray(ref2),
                               rtol=1e-3, atol=1e-3)
    assert out2.shape == (16, output_size)

    print("KERNEL_OK")
</pallas_src>

<mosaic_0001>
module attributes {stable_mosaic.version = 11 : i64} {
  func.func @tcn_kernel(%arg0: i32, %arg1: memref<32x8xf32, #tpu.memory_space<vmem>>, %arg2: memref<8x32xf32, #tpu.memory_space<vmem>>, %arg3: memref<1x32xf32, #tpu.memory_space<vmem>>, %arg4: memref<1x32xf32, #tpu.memory_space<vmem>>, %arg5: memref<1x32xf32, #tpu.memory_space<vmem>>, %arg6: memref<3x3x32xf32, #tpu.memory_space<vmem>>, %arg7: memref<3x32xf32, #tpu.memory_space<vmem>>, %arg8: memref<3x32xf32, #tpu.memory_space<vmem>>, %arg9: memref<3x32xf32, #tpu.memory_space<vmem>>, %arg10: memref<3x32xf32, #tpu.memory_space<vmem>>, %arg11: memref<32x8xf32, #tpu.memory_space<vmem>>, %arg12: memref<1x8xf32, #tpu.memory_space<vmem>>, %arg13: memref<2x8xf32, #tpu.memory_space<vmem>>) attributes {dimension_semantics = [#tpu.dimension_semantics<parallel>], iteration_bounds = array<i64: 1>, scalar_prefetch = 0 : i64, scratch_operands = 0 : i64, tpu.core_type = #tpu.core_type<tc>, window_params = [{transform_indices = @transform_0, window_bounds = array<i64: 32, 8>}, {pipeline_mode = #tpu.pipeline_mode<synchronous>, transform_indices = @transform_1, window_bounds = array<i64: 8, 32>}, {pipeline_mode = #tpu.pipeline_mode<synchronous>, transform_indices = @transform_2, window_bounds = array<i64: 1, 32>}, {pipeline_mode = #tpu.pipeline_mode<synchronous>, transform_indices = @transform_3, window_bounds = array<i64: 1, 32>}, {pipeline_mode = #tpu.pipeline_mode<synchronous>, transform_indices = @transform_4, window_bounds = array<i64: 1, 32>}, {pipeline_mode = #tpu.pipeline_mode<synchronous>, transform_indices = @transform_5, window_bounds = array<i64: 3, 3, 32>}, {pipeline_mode = #tpu.pipeline_mode<synchronous>, transform_indices = @transform_6, window_bounds = array<i64: 3, 32>}, {pipeline_mode = #tpu.pipeline_mode<synchronous>, transform_indices = @transform_7, window_bounds = array<i64: 3, 32>}, {pipeline_mode = #tpu.pipeline_mode<synchronous>, transform_indices = @transform_8, window_bounds = array<i64: 3, 32>}, {pipeline_mode = #tpu.pipeline_mode<synchronous>, transform_indices = @transform_9, window_bounds = array<i64: 3, 32>}, {pipeline_mode = #tpu.pipeline_mode<synchronous>, transform_indices = @transform_10, window_bounds = array<i64: 32, 8>}, {pipeline_mode = #tpu.pipeline_mode<synchronous>, transform_indices = @transform_11, window_bounds = array<i64: 1, 8>}, {transform_indices = @transform_12, window_bounds = array<i64: 2, 8>}]} {
    %c0 = arith.constant 0 : index
    %c0_0 = arith.constant 0 : index
    %0 = vector.load %arg1[%c0, %c0_0] : memref<32x8xf32, #tpu.memory_space<vmem>>, vector<32x8xf32>
    %c0_1 = arith.constant 0 : index
    %c0_2 = arith.constant 0 : index
    %1 = vector.load %arg2[%c0_1, %c0_2] : memref<8x32xf32, #tpu.memory_space<vmem>>, vector<8x32xf32>
    %cst = arith.constant dense<0.000000e+00> : vector<32x32xf32>
    %2 = tpu.matmul %0, %1, %cst {dimension_numbers = #tpu.dot_dimension_numbers<[1], [0], [0], [1], [0, 0, 1, 1], [], []>} : vector<32x8xf32>, vector<8x32xf32>, vector<32x32xf32> -> vector<32x32xf32>
    %c0_3 = arith.constant 0 : index
    %c0_4 = arith.constant 0 : index
    %3 = vector.load %arg3[%c0_3, %c0_4] : memref<1x32xf32, #tpu.memory_space<vmem>>, vector<1x32xf32>
    %4 = vector.broadcast %3 : vector<1x32xf32> to vector<32x32xf32>
    %5 = arith.addf %2, %4 : vector<32x32xf32>
    %c0_5 = arith.constant 0 : index
    %c0_6 = arith.constant 0 : index
    %6 = vector.load %arg4[%c0_5, %c0_6] : memref<1x32xf32, #tpu.memory_space<vmem>>, vector<1x32xf32>
    %c0_7 = arith.constant 0 : index
    %c0_8 = arith.constant 0 : index
    %7 = vector.load %arg5[%c0_7, %c0_8] : memref<1x32xf32, #tpu.memory_space<vmem>>, vector<1x32xf32>
    %cst_9 = arith.constant dense<0.000000e+00> : vector<32xf32>
    %8 = vector.multi_reduction <add>, %5, %cst_9 [1] : vector<32x32xf32> to vector<32xf32>
    %9 = vector.shape_cast %8 : vector<32xf32> to vector<32x1xf32>
    %cst_10 = arith.constant 3.200000e+01 : f32
    %10 = vector.broadcast %cst_10 : f32 to vector<32x1xf32>
    %11 = arith.divf %9, %10 : vector<32x1xf32>
    %12 = vector.broadcast %11 : vector<32x1xf32> to vector<32x32xf32>
    %13 = arith.subf %5, %12 : vector<32x32xf32>
    %14 = arith.mulf %13, %13 : vector<32x32xf32>
    %cst_11 = arith.constant dense<0.000000e+00> : vector<32xf32>
    %15 = vector.multi_reduction <add>, %14, %cst_11 [1] : vector<32x32xf32> to vector<32xf32>
    %16 = vector.shape_cast %15 : vector<32xf32> to vector<32x1xf32>
    %cst_12 = arith.constant 3.200000e+01 : f32
    %17 = vector.broadcast %cst_12 : f32 to vector<32x1xf32>
    %18 = arith.divf %16, %17 : vector<32x1xf32>
    %cst_13 = arith.constant 9.99999974E-6 : f32
    %19 = vector.broadcast %cst_13 : f32 to vector<32x1xf32>
    %20 = arith.addf %18, %19 : vector<32x1xf32>
    %21 = math.rsqrt %20 : vector<32x1xf32>
    %22 = vector.broadcast %21 : vector<32x1xf32> to vector<32x32xf32>
    %23 = arith.mulf %13, %22 : vector<32x32xf32>
    %24 = vector.broadcast %6 : vector<1x32xf32> to vector<32x32xf32>
    %25 = arith.mulf %23, %24 : vector<32x32xf32>
    %26 = vector.broadcast %7 : vector<1x32xf32> to vector<32x32xf32>
    %27 = arith.addf %25, %26 : vector<32x32xf32>
    %28 = tpu.iota {dimensions = array<i32: 0>} : vector<32x32xi32>
    %c16_i32 = arith.constant 16 : i32
    %c0_i32 = arith.constant 0 : i32
    %29 = arith.cmpi eq, %c16_i32, %c0_i32 : i32
    %c1_i32 = arith.constant 1 : i32
    %30 = arith.select %29, %c1_i32, %c16_i32 : i32
    %31 = vector.broadcast %30 : i32 to vector<32x32xi32>
    %32 = arith.remsi %28, %31 : vector<32x32xi32>
    %c0_i32_14 = arith.constant 0 : i32
    %33 = vector.broadcast %c0_i32_14 : i32 to vector<32x32xi32>
    %34 = arith.cmpi ne, %32, %33 : vector<32x32xi32>
    %c0_i32_15 = arith.constant 0 : i32
    %35 = vector.broadcast %c0_i32_15 : i32 to vector<32x32xi32>
    %36 = arith.cmpi slt, %32, %35 : vector<32x32xi32>
    %c0_i32_16 = arith.constant 0 : i32
    %37 = arith.cmpi slt, %30, %c0_i32_16 : i32
    %38 = vector.broadcast %37 : i1 to vector<32x32xi1>
    %39 = vector.broadcast %38 : vector<32x32xi1> to vector<32x32xi1>
    %40 = arith.xori %36, %39 : vector<32x32xi1>
    %41 = arith.andi %40, %34 : vector<32x32xi1>
    %42 = vector.broadcast %30 : i32 to vector<32x32xi32>
    %43 = arith.addi %32, %42 : vector<32x32xi32>
    %44 = arith.select %41, %43, %32 : vector<32x32xi1>, vector<32x32xi32>
    %c1_i32_17 = arith.constant 1 : i32
    %45 = vector.broadcast %c1_i32_17 : i32 to vector<32x32xi32>
    %46 = arith.cmpi sge, %44, %45 : vector<32x32xi32>
    %c2_i32 = arith.constant 2 : i32
    %47 = vector.broadcast %c2_i32 : i32 to vector<32x32xi32>
    %48 = arith.cmpi sge, %44, %47 : vector<32x32xi32>
    %c4_i32 = arith.constant 4 : i32
    %49 = vector.broadcast %c4_i32 : i32 to vector<32x32xi32>
    %50 = arith.cmpi sge, %44, %49 : vector<32x32xi32>
    %c8_i32 = arith.constant 8 : i32
    %51 = vector.broadcast %c8_i32 : i32 to vector<32x32xi32>
    %52 = arith.cmpi sge, %44, %51 : vector<32x32xi32>
    %c0_18 = arith.constant 0 : index
    %c0_19 = arith.constant 0 : index
    %c0_20 = arith.constant 0 : index
    %53 = vector.load %arg6[%c0_18, %c0_19, %c0_20] : memref<3x3x32xf32, #tpu.memory_space<vmem>>, vector<1x3x32xf32>
    %54 = vector.shape_cast %53 : vector<1x3x32xf32> to vector<3x32xf32>
    %55 = vector.extract_strided_slice %54 {offsets = [2, 0], sizes = [1, 32], strides = [1, 1]} : vector<3x32xf32> to vector<1x32xf32>
    %56 = vector.broadcast %55 : vector<1x32xf32> to vector<32x32xf32>
    %57 = arith.mulf %27, %56 : vector<32x32xf32>
    %c0_21 = arith.constant 0 : index
    %c0_22 = arith.constant 0 : index
    %58 = vector.load %arg7[%c0_21, %c0_22] : memref<3x32xf32, #tpu.memory_space<vmem>>, vector<1x32xf32>
    %59 = vector.broadcast %58 : vector<1x32xf32> to vector<32x32xf32>
    %60 = arith.addf %57, %59 : vector<32x32xf32>
    %c2_i32_23 = arith.constant 2 : i32
    %61 = tpu.dynamic_rotate %27 by %c2_i32_23 dim 0 : vector<32x32xf32>, i32 -> vector<32x32xf32>
    %cst_24 = arith.constant 0.000000e+00 : f32
    %62 = vector.broadcast %cst_24 : f32 to vector<32x32xf32>
    %63 = arith.select %48, %61, %62 : vector<32x32xi1>, vector<32x32xf32>
    %64 = vector.extract_strided_slice %54 {offsets = [0, 0], sizes = [1, 32], strides = [1, 1]} : vector<3x32xf32> to vector<1x32xf32>
    %65 = vector.broadcast %64 : vector<1x32xf32> to vector<32x32xf32>
    %66 = arith.mulf %63, %65 : vector<32x32xf32>
    %67 = arith.addf %60, %66 : vector<32x32xf32>
    %c1_i32_25 = arith.constant 1 : i32
    %68 = tpu.dynamic_rotate %27 by %c1_i32_25 dim 0 : vector<32x32xf32>, i32 -> vector<32x32xf32>
    %cst_26 = arith.constant 0.000000e+00 : f32
    %69 = vector.broadcast %cst_26 : f32 to vector<32x32xf32>
    %70 = arith.select %46, %68, %69 : vector<32x32xi1>, vector<32x32xf32>
    %71 = vector.extract_strided_slice %54 {offsets = [1, 0], sizes = [1, 32], strides = [1, 1]} : vector<3x32xf32> to vector<1x32xf32>
    %72 = vector.broadcast %71 : vector<1x32xf32> to vector<32x32xf32>
    %73 = arith.mulf %70, %72 : vector<32x32xf32>
    %74 = arith.addf %67, %73 : vector<32x32xf32>
    %c0_27 = arith.constant 0 : index
    %c0_28 = arith.constant 0 : index
    %75 = vector.load %arg8[%c0_27, %c0_28] : memref<3x32xf32, #tpu.memory_space<vmem>>, vector<1x32xf32>
    %c0_29 = arith.constant 0 : index
    %c0_30 = arith.constant 0 : index
    %76 = vector.load %arg9[%c0_29, %c0_30] : memref<3x32xf32, #tpu.memory_space<vmem>>, vector<1x32xf32>
    %cst_31 = arith.constant dense<0.000000e+00> : vector<32xf32>
    %77 = vector.multi_reduction <add>, %74, %cst_31 [1] : vector<32x32xf32> to vector<32xf32>
    %78 = vector.shape_cast %77 : vector<32xf32> to vector<32x1xf32>
    %cst_32 = arith.constant 3.200000e+01 : f32
    %79 = vector.broadcast %cst_32 : f32 to vector<32x1xf32>
    %80 = arith.divf %78, %79 : vector<32x1xf32>
    %81 = vector.broadcast %80 : vector<32x1xf32> to vector<32x32xf32>
    %82 = arith.subf %74, %81 : vector<32x32xf32>
    %83 = arith.mulf %82, %82 : vector<32x32xf32>
    %cst_33 = arith.constant dense<0.000000e+00> : vector<32xf32>
    %84 = vector.multi_reduction <add>, %83, %cst_33 [1] : vector<32x32xf32> to vector<32xf32>
    %85 = vector.shape_cast %84 : vector<32xf32> to vector<32x1xf32>
    %cst_34 = arith.constant 3.200000e+01 : f32
    %86 = vector.broadcast %cst_34 : f32 to vector<32x1xf32>
    %87 = arith.divf %85, %86 : vector<32x1xf32>
    %cst_35 = arith.constant 9.99999974E-6 : f32
    %88 = vector.broadcast %cst_35 : f32 to vector<32x1xf32>
    %89 = arith.addf %87, %88 : vector<32x1xf32>
    %90 = math.rsqrt %89 : vector<32x1xf32>
    %91 = vector.broadcast %90 : vector<32x1xf32> to vector<32x32xf32>
    %92 = arith.mulf %82, %91 : vector<32x32xf32>
    %93 = vector.broadcast %75 : vector<1x32xf32> to vector<32x32xf32>
    %94 = arith.mulf %92, %93 : vector<32x32xf32>
    %95 = vector.broadcast %76 : vector<1x32xf32> to vector<32x32xf32>
    %96 = arith.addf %94, %95 : vector<32x32xf32>
    %cst_36 = arith.constant 0.000000e+00 : f32
    %97 = vector.broadcast %cst_36 : f32 to vector<32x32xf32>
    %98 = arith.cmpf oge, %96, %97 : vector<32x32xf32>
    %cst_37 = arith.constant 0.00999999977 : f32
    %99 = vector.broadcast %cst_37 : f32 to vector<32x32xf32>
    %100 = arith.mulf %99, %96 : vector<32x32xf32>
    %101 = arith.select %98, %96, %100 : vector<32x32xi1>, vector<32x32xf32>
    %c0_38 = arith.constant 0 : index
    %c0_39 = arith.constant 0 : index
    %102 = vector.load %arg10[%c0_38, %c0_39] : memref<3x32xf32, #tpu.memory_space<vmem>>, vector<1x32xf32>
    %103 = vector.broadcast %102 : vector<1x32xf32> to vector<32x32xf32>
    %104 = arith.mulf %103, %101 : vector<32x32xf32>
    %105 = arith.addf %27, %104 : vector<32x32xf32>
    %c1 = arith.constant 1 : index
    %c0_40 = arith.constant 0 : index
    %c0_41 = arith.constant 0 : index
    %106 = vector.load %arg6[%c1, %c0_40, %c0_41] : memref<3x3x32xf32, #tpu.memory_space<vmem>>, vector<1x3x32xf32>
    %107 = vector.shape_cast %106 : vector<1x3x32xf32> to vector<3x32xf32>
    %108 = vector.extract_strided_slice %107 {offsets = [2, 0], sizes = [1, 32], strides = [1, 1]} : vector<3x32xf32> to vector<1x32xf32>
    %109 = vector.broadcast %108 : vector<1x32xf32> to vector<32x32xf32>
    %110 = arith.mulf %105, %109 : vector<32x32xf32>
    %c1_42 = arith.constant 1 : index
    %c0_43 = arith.constant 0 : index
    %111 = vector.load %arg7[%c1_42, %c0_43] : memref<3x32xf32, #tpu.memory_space<vmem>>, vector<1x32xf32>
    %112 = vector.broadcast %111 : vector<1x32xf32> to vector<32x32xf32>
    %113 = arith.addf %110, %112 : vector<32x32xf32>
    %c4_i32_44 = arith.constant 4 : i32
    %114 = tpu.dynamic_rotate %105 by %c4_i32_44 dim 0 : vector<32x32xf32>, i32 -> vector<32x32xf32>
    %cst_45 = arith.constant 0.000000e+00 : f32
    %115 = vector.broadcast %cst_45 : f32 to vector<32x32xf32>
    %116 = arith.select %50, %114, %115 : vector<32x32xi1>, vector<32x32xf32>
    %117 = vector.extract_strided_slice %107 {offsets = [0, 0], sizes = [1, 32], strides = [1, 1]} : vector<3x32xf32> to vector<1x32xf32>
    %118 = vector.broadcast %117 : vector<1x32xf32> to vector<32x32xf32>
    %119 = arith.mulf %116, %118 : vector<32x32xf32>
    %120 = arith.addf %113, %119 : vector<32x32xf32>
    %c2_i32_46 = arith.constant 2 : i32
    %121 = tpu.dynamic_rotate %105 by %c2_i32_46 dim 0 : vector<32x32xf32>, i32 -> vector<32x32xf32>
    %cst_47 = arith.constant 0.000000e+00 : f32
    %122 = vector.broadcast %cst_47 : f32 to vector<32x32xf32>
    %123 = arith.select %48, %121, %122 : vector<32x32xi1>, vector<32x32xf32>
    %124 = vector.extract_strided_slice %107 {offsets = [1, 0], sizes = [1, 32], strides = [1, 1]} : vector<3x32xf32> to vector<1x32xf32>
    %125 = vector.broadcast %124 : vector<1x32xf32> to vector<32x32xf32>
    %126 = arith.mulf %123, %125 : vector<32x32xf32>
    %127 = arith.addf %120, %126 : vector<32x32xf32>
    %c1_48 = arith.constant 1 : index
    %c0_49 = arith.constant 0 : index
    %128 = vector.load %arg8[%c1_48, %c0_49] : memref<3x32xf32, #tpu.memory_space<vmem>>, vector<1x32xf32>
    %c1_50 = arith.constant 1 : index
    %c0_51 = arith.constant 0 : index
    %129 = vector.load %arg9[%c1_50, %c0_51] : memref<3x32xf32, #tpu.memory_space<vmem>>, vector<1x32xf32>
    %cst_52 = arith.constant dense<0.000000e+00> : vector<32xf32>
    %130 = vector.multi_reduction <add>, %127, %cst_52 [1] : vector<32x32xf32> to vector<32xf32>
    %131 = vector.shape_cast %130 : vector<32xf32> to vector<32x1xf32>
    %cst_53 = arith.constant 3.200000e+01 : f32
    %132 = vector.broadcast %cst_53 : f32 to vector<32x1xf32>
    %133 = arith.divf %131, %132 : vector<32x1xf32>
    %134 = vector.broadcast %133 : vector<32x1xf32> to vector<32x32xf32>
    %135 = arith.subf %127, %134 : vector<32x32xf32>
    %136 = arith.mulf %135, %135 : vector<32x32xf32>
    %cst_54 = arith.constant dense<0.000000e+00> : vector<32xf32>
    %137 = vector.multi_reduction <add>, %136, %cst_54 [1] : vector<32x32xf32> to vector<32xf32>
    %138 = vector.shape_cast %137 : vector<32xf32> to vector<32x1xf32>
    %cst_55 = arith.constant 3.200000e+01 : f32
    %139 = vector.broadcast %cst_55 : f32 to vector<32x1xf32>
    %140 = arith.divf %138, %139 : vector<32x1xf32>
    %cst_56 = arith.constant 9.99999974E-6 : f32
    %141 = vector.broadcast %cst_56 : f32 to vector<32x1xf32>
    %142 = arith.addf %140, %141 : vector<32x1xf32>
    %143 = math.rsqrt %142 : vector<32x1xf32>
    %144 = vector.broadcast %143 : vector<32x1xf32> to vector<32x32xf32>
    %145 = arith.mulf %135, %144 : vector<32x32xf32>
    %146 = vector.broadcast %128 : vector<1x32xf32> to vector<32x32xf32>
    %147 = arith.mulf %145, %146 : vector<32x32xf32>
    %148 = vector.broadcast %129 : vector<1x32xf32> to vector<32x32xf32>
    %149 = arith.addf %147, %148 : vector<32x32xf32>
    %cst_57 = arith.constant 0.000000e+00 : f32
    %150 = vector.broadcast %cst_57 : f32 to vector<32x32xf32>
    %151 = arith.cmpf oge, %149, %150 : vector<32x32xf32>
    %cst_58 = arith.constant 0.00999999977 : f32
    %152 = vector.broadcast %cst_58 : f32 to vector<32x32xf32>
    %153 = arith.mulf %152, %149 : vector<32x32xf32>
    %154 = arith.select %151, %149, %153 : vector<32x32xi1>, vector<32x32xf32>
    %c1_59 = arith.constant 1 : index
    %c0_60 = arith.constant 0 : index
    %155 = vector.load %arg10[%c1_59, %c0_60] : memref<3x32xf32, #tpu.memory_space<vmem>>, vector<1x32xf32>
    %156 = vector.broadcast %155 : vector<1x32xf32> to vector<32x32xf32>
    %157 = arith.mulf %156, %154 : vector<32x32xf32>
    %158 = arith.addf %105, %157 : vector<32x32xf32>
    %c2 = arith.constant 2 : index
    %c0_61 = arith.constant 0 : index
    %c0_62 = arith.constant 0 : index
    %159 = vector.load %arg6[%c2, %c0_61, %c0_62] : memref<3x3x32xf32, #tpu.memory_space<vmem>>, vector<1x3x32xf32>
    %160 = vector.shape_cast %159 : vector<1x3x32xf32> to vector<3x32xf32>
    %161 = vector.extract_strided_slice %160 {offsets = [2, 0], sizes = [1, 32], strides = [1, 1]} : vector<3x32xf32> to vector<1x32xf32>
    %162 = vector.broadcast %161 : vector<1x32xf32> to vector<32x32xf32>
    %163 = arith.mulf %158, %162 : vector<32x32xf32>
    %c2_63 = arith.constant 2 : index
    %c0_64 = arith.constant 0 : index
    %164 = vector.load %arg7[%c2_63, %c0_64] : memref<3x32xf32, #tpu.memory_space<vmem>>, vector<1x32xf32>
    %165 = vector.broadcast %164 : vector<1x32xf32> to vector<32x32xf32>
    %166 = arith.addf %163, %165 : vector<32x32xf32>
    %c8_i32_65 = arith.constant 8 : i32
    %167 = tpu.dynamic_rotate %158 by %c8_i32_65 dim 0 : vector<32x32xf32>, i32 -> vector<32x32xf32>
    %cst_66 = arith.constant 0.000000e+00 : f32
    %168 = vector.broadcast %cst_66 : f32 to vector<32x32xf32>
    %169 = arith.select %52, %167, %168 : vector<32x32xi1>, vector<32x32xf32>
    %170 = vector.extract_strided_slice %160 {offsets = [0, 0], sizes = [1, 32], strides = [1, 1]} : vector<3x32xf32> to vector<1x32xf32>
    %171 = vector.broadcast %170 : vector<1x32xf32> to vector<32x32xf32>
    %172 = arith.mulf %169, %171 : vector<32x32xf32>
    %173 = arith.addf %166, %172 : vector<32x32xf32>
    %c4_i32_67 = arith.constant 4 : i32
    %174 = tpu.dynamic_rotate %158 by %c4_i32_67 dim 0 : vector<32x32xf32>, i32 -> vector<32x32xf32>
    %cst_68 = arith.constant 0.000000e+00 : f32
    %175 = vector.broadcast %cst_68 : f32 to vector<32x32xf32>
    %176 = arith.select %50, %174, %175 : vector<32x32xi1>, vector<32x32xf32>
    %177 = vector.extract_strided_slice %160 {offsets = [1, 0], sizes = [1, 32], strides = [1, 1]} : vector<3x32xf32> to vector<1x32xf32>
    %178 = vector.broadcast %177 : vector<1x32xf32> to vector<32x32xf32>
    %179 = arith.mulf %176, %178 : vector<32x32xf32>
    %180 = arith.addf %173, %179 : vector<32x32xf32>
    %c2_69 = arith.constant 2 : index
    %c0_70 = arith.constant 0 : index
    %181 = vector.load %arg8[%c2_69, %c0_70] : memref<3x32xf32, #tpu.memory_space<vmem>>, vector<1x32xf32>
    %c2_71 = arith.constant 2 : index
    %c0_72 = arith.constant 0 : index
    %182 = vector.load %arg9[%c2_71, %c0_72] : memref<3x32xf32, #tpu.memory_space<vmem>>, vector<1x32xf32>
    %cst_73 = arith.constant dense<0.000000e+00> : vector<32xf32>
    %183 = vector.multi_reduction <add>, %180, %cst_73 [1] : vector<32x32xf32> to vector<32xf32>
    %184 = vector.shape_cast %183 : vector<32xf32> to vector<32x1xf32>
    %cst_74 = arith.constant 3.200000e+01 : f32
    %185 = vector.broadcast %cst_74 : f32 to vector<32x1xf32>
    %186 = arith.divf %184, %185 : vector<32x1xf32>
    %187 = vector.broadcast %186 : vector<32x1xf32> to vector<32x32xf32>
    %188 = arith.subf %180, %187 : vector<32x32xf32>
    %189 = arith.mulf %188, %188 : vector<32x32xf32>
    %cst_75 = arith.constant dense<0.000000e+00> : vector<32xf32>
    %190 = vector.multi_reduction <add>, %189, %cst_75 [1] : vector<32x32xf32> to vector<32xf32>
    %191 = vector.shape_cast %190 : vector<32xf32> to vector<32x1xf32>
    %cst_76 = arith.constant 3.200000e+01 : f32
    %192 = vector.broadcast %cst_76 : f32 to vector<32x1xf32>
    %193 = arith.divf %191, %192 : vector<32x1xf32>
    %cst_77 = arith.constant 9.99999974E-6 : f32
    %194 = vector.broadcast %cst_77 : f32 to vector<32x1xf32>
    %195 = arith.addf %193, %194 : vector<32x1xf32>
    %196 = math.rsqrt %195 : vector<32x1xf32>
    %197 = vector.broadcast %196 : vector<32x1xf32> to vector<32x32xf32>
    %198 = arith.mulf %188, %197 : vector<32x32xf32>
    %199 = vector.broadcast %181 : vector<1x32xf32> to vector<32x32xf32>
    %200 = arith.mulf %198, %199 : vector<32x32xf32>
    %201 = vector.broadcast %182 : vector<1x32xf32> to vector<32x32xf32>
    %202 = arith.addf %200, %201 : vector<32x32xf32>
    %cst_78 = arith.constant 0.000000e+00 : f32
    %203 = vector.broadcast %cst_78 : f32 to vector<32x32xf32>
    %204 = arith.cmpf oge, %202, %203 : vector<32x32xf32>
    %cst_79 = arith.constant 0.00999999977 : f32
    %205 = vector.broadcast %cst_79 : f32 to vector<32x32xf32>
    %206 = arith.mulf %205, %202 : vector<32x32xf32>
    %207 = arith.select %204, %202, %206 : vector<32x32xi1>, vector<32x32xf32>
    %c2_80 = arith.constant 2 : index
    %c0_81 = arith.constant 0 : index
    %208 = vector.load %arg10[%c2_80, %c0_81] : memref<3x32xf32, #tpu.memory_space<vmem>>, vector<1x32xf32>
    %209 = vector.broadcast %208 : vector<1x32xf32> to vector<32x32xf32>
    %210 = arith.mulf %209, %207 : vector<32x32xf32>
    %211 = arith.addf %158, %210 : vector<32x32xf32>
    %cst_82 = arith.constant 0.000000e+00 : f32
    %212 = vector.broadcast %cst_82 : f32 to vector<32x32xf32>
    %213 = arith.cmpf oge, %211, %212 : vector<32x32xf32>
    %cst_83 = arith.constant 0.00999999977 : f32
    %214 = vector.broadcast %cst_83 : f32 to vector<32x32xf32>
    %215 = arith.mulf %214, %211 : vector<32x32xf32>
    %216 = arith.select %213, %211, %215 : vector<32x32xi1>, vector<32x32xf32>
    %217 = vector.shape_cast %216 : vector<32x32xf32> to vector<2x16x32xf32>
    %cst_84 = arith.constant dense<0.000000e+00> : vector<2x32xf32>
    %218 = vector.multi_reduction <add>, %217, %cst_84 [1] : vector<2x16x32xf32> to vector<2x32xf32>
    %cst_85 = arith.constant 1.600000e+01 : f32
    %219 = vector.broadcast %cst_85 : f32 to vector<2x32xf32>
    %220 = arith.divf %218, %219 : vector<2x32xf32>
    %c0_86 = arith.constant 0 : index
    %c0_87 = arith.constant 0 : index
    %221 = vector.load %arg11[%c0_86, %c0_87] : memref<32x8xf32, #tpu.memory_space<vmem>>, vector<32x8xf32>
    %cst_88 = arith.constant dense<0.000000e+00> : vector<2x8xf32>
    %222 = tpu.matmul %220, %221, %cst_88 {dimension_numbers = #tpu.dot_dimension_numbers<[1], [0], [0], [1], [0, 0, 1, 1], [], []>} : vector<2x32xf32>, vector<32x8xf32>, vector<2x8xf32> -> vector<2x8xf32>
    %c0_89 = arith.constant 0 : index
    %c0_90 = arith.constant 0 : index
    %223 = vector.load %arg12[%c0_89, %c0_90] : memref<1x8xf32, #tpu.memory_space<vmem>>, vector<1x8xf32>
    %224 = vector.broadcast %223 : vector<1x8xf32> to vector<2x8xf32>
    %225 = arith.addf %222, %224 : vector<2x8xf32>
    %c0_91 = arith.constant 0 : index
    %c0_92 = arith.constant 0 : index
    %226 = vector.load %arg13[%c0_91, %c0_92] : memref<2x8xf32, #tpu.memory_space<vmem>>, vector<2x8xf32>
    tpu.vector_store %arg13[%c0_91, %c0_92], %225 {strides = array<i32>} : memref<2x8xf32, #tpu.memory_space<vmem>>, vector<2x8xf32>,
    return
  }
  func.func @transform_0(%arg0: i32) -> (i32, i32) {
    %c0_i32 = arith.constant 0 : i32
    %c0_i32_0 = arith.constant 0 : i32
    return %arg0, %c0_i32 : i32, i32
  }
  func.func @transform_1(%arg0: i32) -> (i32, i32) {
    %c0_i32 = arith.constant 0 : i32
    %c0_i32_0 = arith.constant 0 : i32
    %c0_i32_1 = arith.constant 0 : i32
    return %c0_i32, %c0_i32_0 : i32, i32
  }
  func.func @transform_2(%arg0: i32) -> (i32, i32) {
    %c0_i32 = arith.constant 0 : i32
    %c0_i32_0 = arith.constant 0 : i32
    %c0_i32_1 = arith.constant 0 : i32
    return %c0_i32, %c0_i32_0 : i32, i32
  }
  func.func @transform_3(%arg0: i32) -> (i32, i32) {
    %c0_i32 = arith.constant 0 : i32
    %c0_i32_0 = arith.constant 0 : i32
    %c0_i32_1 = arith.constant 0 : i32
    return %c0_i32, %c0_i32_0 : i32, i32
  }
  func.func @transform_4(%arg0: i32) -> (i32, i32) {
    %c0_i32 = arith.constant 0 : i32
    %c0_i32_0 = arith.constant 0 : i32
    %c0_i32_1 = arith.constant 0 : i32
    return %c0_i32, %c0_i32_0 : i32, i32
  }
  func.func @transform_5(%arg0: i32) -> (i32, i32, i32) {
    %c0_i32 = arith.constant 0 : i32
    %c0_i32_0 = arith.constant 0 : i32
    %c0_i32_1 = arith.constant 0 : i32
    %c0_i32_2 = arith.constant 0 : i32
    return %c0_i32, %c0_i32_0, %c0_i32_1 : i32, i32, i32
  }
  func.func @transform_6(%arg0: i32) -> (i32, i32) {
    %c0_i32 = arith.constant 0 : i32
    %c0_i32_0 = arith.constant 0 : i32
    %c0_i32_1 = arith.constant 0 : i32
    return %c0_i32, %c0_i32_0 : i32, i32
  }
  func.func @transform_7(%arg0: i32) -> (i32, i32) {
    %c0_i32 = arith.constant 0 : i32
    %c0_i32_0 = arith.constant 0 : i32
    %c0_i32_1 = arith.constant 0 : i32
    return %c0_i32, %c0_i32_0 : i32, i32
  }
  func.func @transform_8(%arg0: i32) -> (i32, i32) {
    %c0_i32 = arith.constant 0 : i32
    %c0_i32_0 = arith.constant 0 : i32
    %c0_i32_1 = arith.constant 0 : i32
    return %c0_i32, %c0_i32_0 : i32, i32
  }
  func.func @transform_9(%arg0: i32) -> (i32, i32) {
    %c0_i32 = arith.constant 0 : i32
    %c0_i32_0 = arith.constant 0 : i32
    %c0_i32_1 = arith.constant 0 : i32
    return %c0_i32, %c0_i32_0 : i32, i32
  }
  func.func @transform_10(%arg0: i32) -> (i32, i32) {
    %c0_i32 = arith.constant 0 : i32
    %c0_i32_0 = arith.constant 0 : i32
    %c0_i32_1 = arith.constant 0 : i32
    return %c0_i32, %c0_i32_0 : i32, i32
  }
  func.func @transform_11(%arg0: i32) -> (i32, i32) {
    %c0_i32 = arith.constant 0 : i32
    %c0_i32_0 = arith.constant 0 : i32
    %c0_i32_1 = arith.constant 0 : i32
    return %c0_i32, %c0_i32_0 : i32, i32
  }
  func.func @transform_12(%arg0: i32) -> (i32, i32) {
    %c0_i32 = arith.constant 0 : i32
    %c0_i32_0 = arith.constant 0 : i32
    return %arg0, %c0_i32 : i32, i32
  }
}

</mosaic_0001>

<bundles_post_ra>
// kernel: tpu_custom_call.1
= control target key start
LH: loop header
LB: loop body
LE: loop exit
PB: predicated region body
PF: predicated region fallthrough
CT: control target
= control target key end

     0   :  { %vm54_vm0 = vcmask 64512   ;;  %s1398_s0 = inlined_call_operand.vmem [shape: f32[32,8], index: 0, kind: input, shape index: {}]   ;;  %s1399_s1 = inlined_call_operand.vmem [shape: f32[8,32], index: 1, kind: input, shape index: {}]   ;;  %s1400_s2 = inlined_call_operand.vmem [shape: f32[1,32], index: 2, kind: input, shape index: {}]   ;;  %s1401_s3 = inlined_call_operand.vmem [shape: f32[1,32], index: 3, kind: input, shape index: {}]   ;;  %s1402_s4 = inlined_call_operand.vmem [shape: f32[1,32], index: 4, kind: input, shape index: {}]   ;;  %s1403_s5 = inlined_call_operand.vmem [shape: f32[3,3,32], index: 5, kind: input, shape index: {}]   ;;  %s1404_s6 = inlined_call_operand.vmem [shape: f32[3,32], index: 6, kind: input, shape index: {}]   ;;  %s1405_s7 = inlined_call_operand.vmem [shape: f32[3,32], index: 7, kind: input, shape index: {}]   ;;  %s1406_s8 = inlined_call_operand.vmem [shape: f32[3,32], index: 8, kind: input, shape index: {}]   ;;  %s1407_s9 = inlined_call_operand.vmem [shape: f32[3,32], index: 9, kind: input, shape index: {}]   ;;  %s1408_s10 = inlined_call_operand.vmem [shape: f32[32,8], index: 10, kind: input, shape index: {}]   ;;  %s1409_s11 = inlined_call_operand.vmem [shape: f32[1,8], index: 11, kind: input, shape index: {}]   ;;  %s1410_s12 = inlined_call_operand.hbm [shape: f32[2,8], index: 12, kind: output, shape index: {}]  }
   0x1   :  { %v46_v0 = vld [vmem:[%s1399_s1] sm:$0xff]  ;;  %v43_v2 = vld [vmem:[%s1398_s0 + $0x8] sm:$0xff]  ;;  %v44_v3 = vld [vmem:[%s1398_s0 + $0x10] sm:$0xff] }
   0x2   :  { %v42_v1 = vld [vmem:[%s1398_s0] sm:$0xff]  ;;  %946 = vmatprep.subr.mxu0 %v46_v0 }
   0x3   :  { %948 = vmatprep.mubr.msk.f32.mxu0 %vm54_vm0, %v42_v1 }
   0x4   :  { %17 = vsyncpa [#allocation3], 0  ;;  %947 = vmatpush3.msra.mxu0 %v46_v0  ;;  %v45_v4 = vld [vmem:[%s1398_s0 + $0x18] sm:$0xff]  ;;  %v913_v5 = vld [vmem:[%s1400_s2] ss:$0 sm:$0xff]  ;;  %vm154_vm1 = vcmask 261120   ;;  %v228_v49 = vlaneseq }
   0x5   :  { %949 = vmatmul.mubr.msk.f32.vlgmr.msra.gmra.mrb[0].mxu0 %vm54_vm0, %v43_v2  ;;  %v918_v53 = vld [vmem:[%s1401_s3] ss:$0 sm:$0xff] }
   0x6   :  { %951 = vmatprep.mubr.msk.f32.mxu0 %vm54_vm0, %v44_v3  ;;  %v1126_v51 = vshrl.u32 %v228_v49, 7  ;;  %v919_v56 = vld [vmem:[%s1402_s4] ss:$0 sm:$0xff] }
   0x7   :  { %v297_v60 = vld [vmem:[%s1403_s5] sm:$0x7] }
   0x8   :  { %v231_v55 = vadd.s32 16, %v1126_v51  ;;  %v1136_v58 = vsub.s32 2, %v1126_v51  ;;  %v1142_v61 = vsub.s32 0, %v1126_v51  ;;  %v1145_v0 = vsub.s32 1, %v1126_v51 }
   0x9   :  { %952 = vmatmul.mubr.msk.f32.gmra.mrb[2].mxu0 %vm54_vm0, %v45_v4  ;;  %vm319_vm2 = vcmp.lt.s32.totalorder %v1126_v51, 2  ;;  %vm344_vm3 = vcmp.lt.s32.totalorder %v1126_v51, 1  ;;  %vm483_vm12 = vcmp.lt.s32.totalorder %v1126_v51, 4 }
   0xa   :  { %v1147_v1 = vand.u32 15, %v231_v55 }
   0xc   :  { %vm283_vm4 = vcmp.ge.s32.totalorder %v1147_v1, 1  ;;  %vm287_vm5 = vcmp.ge.s32.totalorder %v1147_v1, 2  ;;  %vm291_vm14 = vcmp.ge.s32.totalorder %v1147_v1, 4 }
  0xd8   :  { %v950_v6 = vpop.f32.mrb[0].mxu0 }
  0xd9   :  { %v133_v7 = vpop.f32.mrb[1].mxu0  ;;  %v139_v9 = vadd.f32 %v950_v6, %v913_v5 }
  0xda   :  { %v134_v8 = vadd.f32 %v913_v5, %v133_v7 }
  0xdb   :  { %v158_v16 = vsel %vm154_vm1, %v139_v9, 0.0 }
  0xdc   :  { %v953_v10 = vpop.f32.mrb[2].mxu0  ;;  %v155_v11 = vsel %vm154_vm1, %v134_v8, 0.0 }
  0xdd   :  { %v143_v12 = vpop.f32.mrb[3].mxu0  ;;  %156 = vadd.xlane.f32.xlu0 %v155_v11  ;;  %v149_v14 = vadd.f32 %v953_v10, %v913_v5 }
  0xde   :  { %v144_v13 = vadd.f32 %v913_v5, %v143_v12  ;;  %v301_v5 = vrot.slane %v297_v60, %v1136_v58  ;;  %v356_v12 = vrot.slane %v297_v60, %v1145_v0 }
  0xdf   :  { %v164_v17 = vsel %vm154_vm1, %v149_v14, 0.0 }
  0xe0   :  { %v161_v15 = vsel %vm154_vm1, %v144_v13, 0.0 }
  0xe1   :  { %162 = vadd.xlane.f32.xlu1 %v161_v15  ;;  %159 = vadd.xlane.f32.xlu0 %v158_v16 }
  0xe5   :  { %165 = vadd.xlane.f32.xlu1 %v164_v17 }
 0x16a   :  { %v157_v18 = vpop.xlane.xlu0 %156 }
 0x16b   :  { %v168_v19 = vmul.f32 0.03125, %v157_v18 }
 0x16d   :  { %v172_v20 = vsub.f32 %v134_v8, %v168_v19  ;;  %v331_v8 = vrot.slane %v297_v60, %v1142_v61 }
 0x16e   :  { %v163_v21 = vpop.xlane.xlu1 %162  ;;  %v160_v22 = vpop.xlane.xlu0 %159 }
 0x16f   :  { %v170_v23 = vmul.f32 0.03125, %v163_v21  ;;  %v169_v24 = vmul.f32 0.03125, %v160_v22  ;;  %v176_v25 = vmul.f32 %v172_v20, %v172_v20 }
 0x171   :  { %v174_v26 = vsub.f32 %v144_v13, %v170_v23  ;;  %v173_v27 = vsub.f32 %v139_v9, %v169_v24  ;;  %v180_v28 = vsel %vm154_vm1, %v176_v25, 0.0  ;;  %v1156_v9 = vand.u32 15, %v1126_v51 }
 0x172   :  { %v166_v29 = vpop.xlane.xlu1 %165  ;;  %181 = vadd.xlane.f32.xlu0 %v180_v28 }
 0x173   :  { %v171_v30 = vmul.f32 0.03125, %v166_v29  ;;  %v178_v31 = vmul.f32 %v174_v26, %v174_v26  ;;  %v177_v32 = vmul.f32 %v173_v27, %v173_v27  ;;  %vm281_vm6 = vcmp.ge.s32.totalorder %v1156_v9, 1 }
 0x174   :  { %vm285_vm7 = vcmp.ge.s32.totalorder %v1156_v9, 2  ;;  %vm289_vm13 = vcmp.ge.s32.totalorder %v1156_v9, 4 }
 0x175   :  { %v175_v33 = vsub.f32 %v149_v14, %v171_v30  ;;  %v186_v34 = vsel %vm154_vm1, %v178_v31, 0.0  ;;  %v183_v35 = vsel %vm154_vm1, %v177_v32, 0.0 }
 0x176   :  { %187 = vadd.xlane.f32.xlu0 %v186_v34  ;;  %184 = vadd.xlane.f32.xlu1 %v183_v35 }
 0x177   :  { %v179_v36 = vmul.f32 %v175_v33, %v175_v33 }
 0x179   :  { %v189_v37 = vsel %vm154_vm1, %v179_v36, 0.0 }
 0x17a   :  { %190 = vadd.xlane.f32.xlu1 %v189_v37 }
 0x1ff   :  { %v182_v38 = vpop.xlane.xlu0 %181 }
 0x200   :  { %v192_v39 = vmul.f32 0.03125, %v182_v38 }
 0x202   :  { %v196_v40 = vadd.f32 1e-05, %v192_v39 }
 0x203   :  { %v185_v41 = vpop.xlane.xlu1 %184  ;;  %v188_v42 = vpop.xlane.xlu0 %187 }
 0x204   :  { %975 = vrsqrt.f32 %v196_v40  ;;  %v193_v43 = vmul.f32 0.03125, %v185_v41  ;;  %v194_v44 = vmul.f32 0.03125, %v188_v42 }
 0x206   :  { %v197_v45 = vadd.f32 1e-05, %v193_v43  ;;  %v198_v46 = vadd.f32 1e-05, %v194_v44 }
 0x207   :  { %v191_v47 = vpop.xlane.xlu1 %190 }
 0x208   :  { %977 = vrsqrt.f32 %v197_v45  ;;  %v195_v48 = vmul.f32 0.03125, %v191_v47 }
 0x209   :  { %979 = vrsqrt.f32 %v198_v46 }
 0x20a   :  { %v199_v50 = vadd.f32 1e-05, %v195_v48 }
 0x20c   :  { %981 = vrsqrt.f32 %v199_v50 }
 0x20e   :  { %v976_v52 = vpop.eup %975 }
 0x20f   :  { %v204_v54 = vmul.f32 %v976_v52, %v172_v20  ;;  %v920_v20 = vld [vmem:[%s1404_s6] ss:$0 sm:$0xff] }
 0x211   :  { %v214_v57 = vmul.f32 %v918_v53, %v204_v54 }
 0x212   :  { %v978_v59 = vpop.eup %977 }
 0x213   :  { %v980_v62 = vpop.eup %979  ;;  %v205_v63 = vmul.f32 %v978_v59, %v173_v27  ;;  %v1149_v2 = vadd.f32 %v919_v56, %v214_v57 }
 0x214   :  { %v206_v3 = vmul.f32 %v980_v62, %v174_v26 }
 0x215   :  { %v215_v4 = vmul.f32 %v918_v53, %v205_v63  ;;  %v315_v14 = vrot.slane %v1149_v2, 6  ;;  %v340_v15 = vrot.slane %v1149_v2, 7  ;;  %v302_v28 = vmul.f32 %v301_v5, %v1149_v2 }
 0x216   :  { %v982_v6 = vpop.eup %981  ;;  %v216_v7 = vmul.f32 %v918_v53, %v206_v3 }
 0x217   :  { %v207_v10 = vmul.f32 %v982_v6, %v175_v33  ;;  %v1158_v11 = vadd.f32 %v919_v56, %v215_v4  ;;  %v311_v45 = vadd.f32 %v920_v20, %v302_v28 }
 0x218   :  { %v1162_v13 = vadd.f32 %v919_v56, %v216_v7 }
 0x219   :  { %v217_v16 = vmul.f32 %v918_v53, %v207_v10  ;;  %v303_v17 = vmul.f32 %v301_v5, %v1158_v11  ;;  %v316_v18 = vrot.slane %v1158_v11, 6  ;;  %v341_v19 = vrot.slane %v1158_v11, 7 }
 0x21a   :  { %v317_v21 = vrot.slane %v1162_v13, 6  ;;  %v342_v22 = vrot.slane %v1162_v13, 7  ;;  %v304_v29 = vmul.f32 %v301_v5, %v1162_v13 }
 0x21b   :  { %v312_v23 = vadd.f32 %v920_v20, %v303_v17  ;;  %v322_v24 = vsel %vm319_vm2, %v315_v14, %v316_v18  ;;  %v347_v25 = vsel %vm344_vm3, %v340_v15, %v341_v19  ;;  %v1181_v26 = vadd.f32 %v919_v56, %v217_v16 }
 0x21c   :  { %v333_v27 = vmul.f32 %v331_v8, %v322_v24  ;;  %v321_v30 = vsel %vm319_vm2, %v316_v18, %v317_v21  ;;  %v358_v36 = vmul.f32 %v356_v12, %v347_v25  ;;  %v346_v38 = vsel %vm344_vm3, %v341_v19, %v342_v22 }
 0x21d   :  { %v305_v31 = vmul.f32 %v301_v5, %v1181_v26  ;;  %v318_v32 = vrot.slane %v1181_v26, 6  ;;  %v343_v33 = vrot.slane %v1181_v26, 7  ;;  %v326_v34 = vsel %vm287_vm5, %v321_v30, 0.0 }
 0x21e   :  { %v337_v35 = vadd.f32 %v333_v27, %v312_v23  ;;  %v334_v37 = vmul.f32 %v331_v8, %v326_v34  ;;  %v313_v50 = vadd.f32 %v920_v20, %v304_v29  ;;  %v351_v55 = vsel %vm283_vm4, %v346_v38, 0.0 }
 0x21f   :  { %v314_v39 = vadd.f32 %v920_v20, %v305_v31  ;;  %v320_v40 = vsel %vm319_vm2, %v317_v21, %v318_v32  ;;  %v345_v41 = vsel %vm344_vm3, %v342_v22, %v343_v33  ;;  %v323_v42 = vsel %vm319_vm2, %v318_v32, %v315_v14 }
 0x220   :  { %v362_v43 = vadd.f32 %v358_v36, %v337_v35  ;;  %v335_v44 = vmul.f32 %v331_v8, %v320_v40  ;;  %v324_v46 = vsel %vm285_vm7, %v323_v42, 0.0  ;;  %v360_v47 = vmul.f32 %v356_v12, %v345_v41 }
 0x221   :  { %v332_v48 = vmul.f32 %v331_v8, %v324_v46  ;;  %v348_v49 = vsel %vm344_vm3, %v343_v33, %v340_v15  ;;  %v338_v59 = vadd.f32 %v334_v37, %v313_v50  ;;  %v359_v63 = vmul.f32 %v356_v12, %v351_v55  ;;  %v922_v46 = vld [vmem:[%s1406_s8] ss:$0 sm:$0xff] }
 0x222   :  { %v370_v52 = vsel %vm154_vm1, %v362_v43, 0.0  ;;  %v339_v53 = vadd.f32 %v335_v44, %v314_v39  ;;  %v349_v54 = vsel %vm281_vm6, %v348_v49, 0.0  ;;  %v921_v44 = vld [vmem:[%s1405_s7] ss:$0 sm:$0xff]  ;;  %vm1032_vm4 = vmmov 0  }
 0x223   :  { %371 = vadd.xlane.f32.xlu1 %v370_v52  ;;  %v336_v56 = vadd.f32 %v332_v48, %v311_v45  ;;  %v357_v57 = vmul.f32 %v356_v12, %v349_v54  ;;  %v363_v5 = vadd.f32 %v359_v63, %v338_v59 }
 0x224   :  { %v364_v60 = vadd.f32 %v360_v47, %v339_v53 }
 0x225   :  { %v361_v62 = vadd.f32 %v357_v57, %v336_v56  ;;  %v373_v6 = vsel %vm154_vm1, %v363_v5, 0.0  ;;  %v923_v56 = vld [vmem:[%s1407_s9] ss:$0 sm:$0xff] }
 0x226   :  { %v376_v3 = vsel %vm154_vm1, %v364_v60, 0.0 }
 0x227   :  { %377 = vadd.xlane.f32.xlu1 %v376_v3  ;;  %v367_v4 = vsel %vm154_vm1, %v361_v62, 0.0 }
 0x228   :  { %368 = vadd.xlane.f32.xlu0 %v367_v4 }
 0x22c   :  { %374 = vadd.xlane.f32.xlu0 %v373_v6  ;;  %v924_v6 = vld [vmem:[%s1403_s5 + $0x4] sm:$0x7] }
 0x2b0   :  { %v372_v7 = vpop.xlane.xlu1 %371 }
 0x2b1   :  { %v380_v8 = vmul.f32 0.03125, %v372_v7 }
 0x2b3   :  { %v384_v10 = vsub.f32 %v362_v43, %v380_v8 }
 0x2b4   :  { %v378_v14 = vpop.xlane.xlu1 %377 }
 0x2b5   :  { %v382_v15 = vmul.f32 0.03125, %v378_v14  ;;  %v369_v16 = vpop.xlane.xlu0 %368  ;;  %v388_v17 = vmul.f32 %v384_v10, %v384_v10 }
 0x2b6   :  { %v379_v18 = vmul.f32 0.03125, %v369_v16 }
 0x2b7   :  { %v386_v19 = vsub.f32 %v364_v60, %v382_v15  ;;  %v394_v12 = vsel %vm154_vm1, %v388_v17, 0.0  ;;  %v465_v17 = vrot.slane %v924_v6, %v1136_v58 }
 0x2b8   :  { %v383_v20 = vsub.f32 %v361_v62, %v379_v18  ;;  %395 = vadd.xlane.f32.xlu1 %v394_v12 }
 0x2b9   :  { %v375_v21 = vpop.xlane.xlu0 %374  ;;  %v390_v22 = vmul.f32 %v386_v19, %v386_v19 }
 0x2ba   :  { %v381_v23 = vmul.f32 0.03125, %v375_v21  ;;  %v387_v24 = vmul.f32 %v383_v20, %v383_v20  ;;  %v495_v21 = vrot.slane %v924_v6, %v1142_v61 }
 0x2bb   :  { %v400_v25 = vsel %vm154_vm1, %v390_v22, 0.0 }
 0x2bc   :  { %v385_v27 = vsub.f32 %v363_v5, %v381_v23  ;;  %401 = vadd.xlane.f32.xlu1 %v400_v25  ;;  %v391_v28 = vsel %vm154_vm1, %v387_v24, 0.0 }
 0x2bd   :  { %392 = vadd.xlane.f32.xlu0 %v391_v28 }
 0x2be   :  { %v389_v29 = vmul.f32 %v385_v27, %v385_v27 }
 0x2c0   :  { %v397_v30 = vsel %vm154_vm1, %v389_v29, 0.0 }
 0x2c1   :  { %398 = vadd.xlane.f32.xlu0 %v397_v30  ;;  %v519_v30 = vrot.slane %v924_v6, %v1145_v0 }
 0x345   :  { %v396_v31 = vpop.xlane.xlu1 %395 }
 0x346   :  { %v404_v32 = vmul.f32 0.03125, %v396_v31 }
 0x348   :  { %v408_v33 = vadd.f32 1e-05, %v404_v32 }
 0x349   :  { %v402_v34 = vpop.xlane.xlu1 %401 }
 0x34a   :  { %983 = vrsqrt.f32 %v408_v33  ;;  %v406_v35 = vmul.f32 0.03125, %v402_v34  ;;  %v393_v36 = vpop.xlane.xlu0 %392 }
 0x34b   :  { %v403_v37 = vmul.f32 0.03125, %v393_v36 }
 0x34c   :  { %v410_v38 = vadd.f32 1e-05, %v406_v35 }
 0x34d   :  { %v407_v39 = vadd.f32 1e-05, %v403_v37 }
 0x34e   :  { %985 = vrsqrt.f32 %v410_v38  ;;  %v399_v40 = vpop.xlane.xlu0 %398 }
 0x34f   :  { %987 = vrsqrt.f32 %v407_v39  ;;  %v405_v41 = vmul.f32 0.03125, %v399_v40 }
 0x351   :  { %v409_v42 = vadd.f32 1e-05, %v405_v41 }
 0x353   :  { %989 = vrsqrt.f32 %v409_v42 }
 0x354   :  { %v984_v43 = vpop.eup %983 }
 0x355   :  { %v416_v45 = vmul.f32 %v984_v43, %v384_v10 }
 0x357   :  { %v424_v47 = vmul.f32 %v921_v44, %v416_v45 }
 0x358   :  { %v986_v48 = vpop.eup %985 }
 0x359   :  { %v988_v49 = vpop.eup %987  ;;  %v432_v50 = vadd.f32 %v922_v46, %v424_v47  ;;  %v418_v52 = vmul.f32 %v986_v48, %v386_v19 }
 0x35a   :  { %v415_v53 = vmul.f32 %v988_v49, %v383_v20 }
 0x35b   :  { %vm436_vm8 = vcmp.ge.f32.partialorder %v432_v50, 0.0  ;;  %v440_v54 = vmul.f32 0.01, %v432_v50  ;;  %v426_v55 = vmul.f32 %v921_v44, %v418_v52 }
 0x35c   :  { %v423_v57 = vmul.f32 %v921_v44, %v415_v53 }
 0x35d   :  { %v990_v59 = vpop.eup %989  ;;  %v434_v60 = vadd.f32 %v922_v46, %v426_v55  ;;  %v444_v62 = vsel %vm436_vm8, %v432_v50, %v440_v54 }
 0x35e   :  { %v431_v63 = vadd.f32 %v922_v46, %v423_v57  ;;  %v417_v3 = vmul.f32 %v990_v59, %v385_v27  ;;  %v453_v4 = vmul.f32 %v923_v56, %v444_v62  ;;  %v925_v27 = vld [vmem:[%s1404_s6 + $0x1] ss:$0 sm:$0xff] }
 0x35f   :  { %vm438_vm9 = vcmp.ge.f32.partialorder %v434_v60, 0.0  ;;  %v442_v5 = vmul.f32 0.01, %v434_v60 }
 0x360   :  { %vm435_vm10 = vcmp.ge.f32.partialorder %v431_v63, 0.0  ;;  %v439_v7 = vmul.f32 0.01, %v431_v63  ;;  %v425_v8 = vmul.f32 %v921_v44, %v417_v3  ;;  %v1229_v16 = vadd.f32 %v453_v4, %v1158_v11 }
 0x361   :  { %v446_v10 = vsel %vm438_vm9, %v434_v60, %v442_v5 }
 0x362   :  { %v433_v14 = vadd.f32 %v922_v46, %v425_v8  ;;  %v443_v15 = vsel %vm435_vm10, %v431_v63, %v439_v7  ;;  %v455_v19 = vmul.f32 %v923_v56, %v446_v10  ;;  %v467_v11 = vmul.f32 %v465_v17, %v1229_v16 }
 0x363   :  { %v452_v18 = vmul.f32 %v923_v56, %v443_v15  ;;  %v480_v23 = vrot.slane %v1229_v16, 4  ;;  %v505_v24 = vrot.slane %v1229_v16, 6 }
 0x364   :  { %vm437_vm11 = vcmp.ge.f32.partialorder %v433_v14, 0.0  ;;  %v441_v12 = vmul.f32 0.01, %v433_v14  ;;  %v1239_v22 = vadd.f32 %v455_v19, %v1181_v26  ;;  %v476_v36 = vadd.f32 %v925_v27, %v467_v11 }
 0x365   :  { %v1234_v20 = vadd.f32 %v452_v18, %v1149_v2 }
 0x366   :  { %v445_v25 = vsel %vm437_vm11, %v433_v14, %v441_v12  ;;  %v482_v26 = vrot.slane %v1239_v22, 4  ;;  %v507_v31 = vrot.slane %v1239_v22, 6  ;;  %v469_v47 = vmul.f32 %v465_v17, %v1239_v22 }
 0x367   :  { %v479_v2 = vrot.slane %v1234_v20, 4  ;;  %v504_v28 = vrot.slane %v1234_v20, 6  ;;  %v466_v29 = vmul.f32 %v465_v17, %v1234_v20  ;;  %v454_v32 = vmul.f32 %v923_v56, %v445_v25 }
 0x368   :  { %v478_v57 = vadd.f32 %v925_v27, %v469_v47 }
 0x369   :  { %v486_v33 = vsel %vm483_vm12, %v479_v2, %v480_v23  ;;  %v510_v34 = vsel %vm319_vm2, %v504_v28, %v505_v24  ;;  %v487_v35 = vsel %vm483_vm12, %v482_v26, %v479_v2  ;;  %v511_v39 = vsel %vm319_vm2, %v507_v31, %v504_v28 }
 0x36a   :  { %v497_v37 = vmul.f32 %v495_v21, %v486_v33  ;;  %v488_v38 = vsel %vm289_vm13, %v487_v35, 0.0  ;;  %v475_v40 = vadd.f32 %v925_v27, %v466_v29  ;;  %v512_v42 = vsel %vm285_vm7, %v511_v39, 0.0 }
 0x36b   :  { %v496_v41 = vmul.f32 %v495_v21, %v488_v38  ;;  %v1266_v43 = vadd.f32 %v454_v32, %v1162_v13  ;;  %v521_v45 = vmul.f32 %v519_v30, %v510_v34  ;;  %v520_v46 = vmul.f32 %v519_v30, %v512_v42 }
 0x36c   :  { %v501_v44 = vadd.f32 %v497_v37, %v476_v36 }
 0x36d   :  { %v500_v48 = vadd.f32 %v496_v41, %v475_v40  ;;  %v481_v49 = vrot.slane %v1266_v43, 4  ;;  %v506_v50 = vrot.slane %v1266_v43, 6  ;;  %v468_v52 = vmul.f32 %v465_v17, %v1266_v43 }
 0x36e   :  { %v525_v53 = vadd.f32 %v521_v45, %v501_v44 }
 0x36f   :  { %v524_v54 = vadd.f32 %v520_v46, %v500_v48  ;;  %v484_v13 = vsel %vm483_vm12, %v481_v49, %v482_v26  ;;  %v508_v55 = vsel %vm319_vm2, %v506_v50, %v507_v31  ;;  %v485_v60 = vsel %vm483_vm12, %v480_v23, %v481_v49 }
 0x370   :  { %v533_v56 = vsel %vm154_vm1, %v525_v53, 0.0  ;;  %v499_v59 = vmul.f32 %v495_v21, %v484_v13  ;;  %v477_v63 = vadd.f32 %v925_v27, %v468_v52  ;;  %v490_v3 = vsel %vm291_vm14, %v485_v60, 0.0 }
 0x371   :  { %534 = vadd.xlane.f32.xlu1 %v533_v56  ;;  %v530_v62 = vsel %vm154_vm1, %v524_v54, 0.0  ;;  %v509_v4 = vsel %vm319_vm2, %v505_v24, %v506_v50  ;;  %v523_v6 = vmul.f32 %v519_v30, %v508_v55  ;;  %v498_v7 = vmul.f32 %v495_v21, %v490_v3  ;;  %v927_v56 = vld [vmem:[%s1406_s8 + $0x1] ss:$0 sm:$0xff] }
 0x372   :  { %531 = vadd.xlane.f32.xlu0 %v530_v62  ;;  %v503_v5 = vadd.f32 %v499_v59, %v478_v57  ;;  %v514_v8 = vsel %vm287_vm5, %v509_v4, 0.0  ;;  %v928_v4 = vld [vmem:[%s1407_s9 + $0x1] ss:$0 sm:$0xff] }
 0x373   :  { %v502_v14 = vadd.f32 %v498_v7, %v477_v63  ;;  %v522_v15 = vmul.f32 %v519_v30, %v514_v8  ;;  %v929_v7 = vld [vmem:[%s1403_s5 + $0x8] sm:$0x7] }
 0x374   :  { %v527_v10 = vadd.f32 %v523_v6, %v503_v5 }
 0x375   :  { %v526_v18 = vadd.f32 %v522_v15, %v502_v14 }
 0x376   :  { %v539_v17 = vsel %vm154_vm1, %v527_v10, 0.0 }
 0x377   :  { %540 = vadd.xlane.f32.xlu1 %v539_v17  ;;  %v536_v19 = vsel %vm154_vm1, %v526_v18, 0.0 }
 0x378   :  { %537 = vadd.xlane.f32.xlu0 %v536_v19 }
 0x3fe   :  { %v535_v12 = vpop.xlane.xlu1 %534 }
 0x3ff   :  { %v543_v11 = vmul.f32 0.03125, %v535_v12  ;;  %v532_v23 = vpop.xlane.xlu0 %531  ;;  %v628_v12 = vrot.slane %v929_v7, %v1136_v58 }
 0x400   :  { %v542_v24 = vmul.f32 0.03125, %v532_v23 }
 0x401   :  { %v547_v25 = vsub.f32 %v525_v53, %v543_v11 }
 0x402   :  { %v546_v27 = vsub.f32 %v524_v54, %v542_v24  ;;  %v926_v54 = vld [vmem:[%s1405_s7 + $0x1] ss:$0 sm:$0xff] }
 0x403   :  { %v551_v21 = vmul.f32 %v547_v25, %v547_v25 }
 0x404   :  { %v541_v2 = vpop.xlane.xlu1 %540  ;;  %v550_v28 = vmul.f32 %v546_v27, %v546_v27 }
 0x405   :  { %v545_v29 = vmul.f32 0.03125, %v541_v2  ;;  %v557_v26 = vsel %vm154_vm1, %v551_v21, 0.0  ;;  %v538_v30 = vpop.xlane.xlu0 %537 }
 0x406   :  { %558 = vadd.xlane.f32.xlu1 %v557_v26  ;;  %v554_v31 = vsel %vm154_vm1, %v550_v28, 0.0  ;;  %v544_v33 = vmul.f32 0.03125, %v538_v30  ;;  %v673_v30 = vrot.slane %v929_v7, %v1145_v0 }
 0x407   :  { %v549_v32 = vsub.f32 %v527_v10, %v545_v29  ;;  %555 = vadd.xlane.f32.xlu0 %v554_v31  ;;  %v930_v29 = vld [vmem:[%s1404_s6 + $0x2] ss:$0 sm:$0xff] }
 0x408   :  { %v548_v34 = vsub.f32 %v526_v18, %v544_v33 }
 0x409   :  { %v553_v35 = vmul.f32 %v549_v32, %v549_v32 }
 0x40a   :  { %v552_v37 = vmul.f32 %v548_v34, %v548_v34 }
 0x40b   :  { %v563_v36 = vsel %vm154_vm1, %v553_v35, 0.0 }
 0x40c   :  { %564 = vadd.xlane.f32.xlu1 %v563_v36  ;;  %v560_v38 = vsel %vm154_vm1, %v552_v37, 0.0 }
 0x40d   :  { %561 = vadd.xlane.f32.xlu0 %v560_v38 }
 0x493   :  { %v559_v39 = vpop.xlane.xlu1 %558 }
 0x494   :  { %v567_v40 = vmul.f32 0.03125, %v559_v39  ;;  %v556_v41 = vpop.xlane.xlu0 %555 }
 0x495   :  { %v566_v42 = vmul.f32 0.03125, %v556_v41 }
 0x496   :  { %v571_v44 = vadd.f32 1e-05, %v567_v40 }
 0x497   :  { %v570_v45 = vadd.f32 1e-05, %v566_v42 }
 0x498   :  { %991 = vrsqrt.f32 %v571_v44 }
 0x499   :  { %993 = vrsqrt.f32 %v570_v45  ;;  %v565_v46 = vpop.xlane.xlu1 %564 }
 0x49a   :  { %v569_v47 = vmul.f32 0.03125, %v565_v46  ;;  %v562_v48 = vpop.xlane.xlu0 %561 }
 0x49b   :  { %v568_v50 = vmul.f32 0.03125, %v562_v48 }
 0x49c   :  { %v573_v49 = vadd.f32 1e-05, %v569_v47 }
 0x49d   :  { %v572_v52 = vadd.f32 1e-05, %v568_v50 }
 0x49e   :  { %995 = vrsqrt.f32 %v573_v49 }
 0x49f   :  { %997 = vrsqrt.f32 %v572_v52 }
 0x4a2   :  { %v992_v53 = vpop.eup %991 }
 0x4a3   :  { %v994_v13 = vpop.eup %993  ;;  %v579_v55 = vmul.f32 %v992_v53, %v547_v25  ;;  %v649_v25 = vrot.slane %v929_v7, %v1142_v61 }
 0x4a4   :  { %v578_v57 = vmul.f32 %v994_v13, %v546_v27 }
 0x4a5   :  { %v587_v59 = vmul.f32 %v926_v54, %v579_v55  ;;  %v650_v0 = vmul.f32 0.0, %v649_v25 }
 0x4a6   :  { %v586_v60 = vmul.f32 %v926_v54, %v578_v57 }
 0x4a7   :  { %v595_v62 = vadd.f32 %v927_v56, %v587_v59 }
 0x4a8   :  { %v996_v63 = vpop.eup %995  ;;  %v594_v3 = vadd.f32 %v927_v56, %v586_v60 }
 0x4a9   :  { %v581_v5 = vmul.f32 %v996_v63, %v549_v32  ;;  %vm599_vm15 = vcmp.ge.f32.partialorder %v595_v62, 0.0  ;;  %v603_v6 = vmul.f32 0.01, %v595_v62  ;;  %v998_v8 = vpop.eup %997 }
 0x4aa   :  { %v602_v10 = vmul.f32 0.01, %v594_v3  ;;  %vm598_vm0 = vcmp.ge.f32.partialorder %v594_v3, 0.0  ;;  %v580_v15 = vmul.f32 %v998_v8, %v548_v34 }
 0x4ab   :  { %v589_v14 = vmul.f32 %v926_v54, %v581_v5  ;;  %v607_v17 = vsel %vm599_vm15, %v595_v62, %v603_v6 }
 0x4ac   :  { %v606_v18 = vsel %vm598_vm0, %v594_v3, %v602_v10  ;;  %v616_v19 = vmul.f32 %v928_v4, %v607_v17  ;;  %v588_v23 = vmul.f32 %v926_v54, %v580_v15 }
 0x4ad   :  { %v597_v11 = vadd.f32 %v927_v56, %v589_v14  ;;  %v615_v24 = vmul.f32 %v928_v4, %v606_v18 }
 0x4ae   :  { %v1308_v27 = vadd.f32 %v616_v19, %v1229_v16  ;;  %v596_v2 = vadd.f32 %v927_v56, %v588_v23 }
 0x4af   :  { %v605_v21 = vmul.f32 0.01, %v597_v11  ;;  %v1311_v28 = vadd.f32 %v615_v24, %v1234_v20  ;;  %vm601_vm2 = vcmp.ge.f32.partialorder %v597_v11, 0.0 }
 0x4b0   :  { %v630_v58 = vmul.f32 %v628_v12, %v1308_v27  ;;  %v659_v26 = vrot.slane %v1308_v27, 4  ;;  %v604_v61 = vmul.f32 0.01, %v596_v2  ;;  %vm600_vm3 = vcmp.ge.f32.partialorder %v596_v2, 0.0 }
 0x4b1   :  { %v651_v16 = vmul.f32 %v649_v25, %v1311_v28  ;;  %v658_v31 = vrot.slane %v1311_v28, 4  ;;  %v609_v32 = vsel %vm601_vm2, %v597_v11, %v605_v21  ;;  %v629_v34 = vmul.f32 %v628_v12, %v1311_v28 }
 0x4b2   :  { %v639_v33 = vadd.f32 %v930_v29, %v630_v58  ;;  %v618_v20 = vmul.f32 %v928_v4, %v609_v32  ;;  %v608_v36 = vsel %vm600_vm3, %v596_v2, %v604_v61  ;;  %v810_v61 = vld [vmem:[%s1408_s10] sm:$0xff]  ;;  %v1031_v32 = vmov 0.0|0.0  }
 0x4b3   :  { %v664_v35 = vsel %vm483_vm12, %v658_v31, %v659_v26  ;;  %v617_v40 = vmul.f32 %v928_v4, %v608_v36  ;;  %v638_v42 = vadd.f32 %v930_v29, %v629_v34  ;;  %965 = vmatprep.subr.bf16.mxu1 %v1031_v32  ;;  %v1033_v34 = vmov 0.0  }
 0x4b4   :  { %v655_v37 = vadd.f32 %v651_v16, %v639_v33  ;;  %v675_v38 = vmul.f32 %v673_v30, %v664_v35  ;;  %v1325_v39 = vadd.f32 %v618_v20, %v1239_v22  ;;  %v811_v16 = vld [vmem:[%s1408_s10 + $0x8] sm:$0xff]  ;;  %v813_v20 = vld [vmem:[%s1408_s10 + $0x18] sm:$0xff]  ;;  %962 = vmatprep.mubr.msk.f32.mxu1 %vm1032_vm4, %v1033_v34 }
 0x4b5   :  { %v1330_v46 = vadd.f32 %v617_v40, %v1266_v43  ;;  %v654_v54 = vadd.f32 %v650_v0, %v638_v42  ;;  %v966_v33 = vpack.c.bf16 %v811_v16, %v810_v61 }
 0x4b6   :  { %v679_v41 = vadd.f32 %v675_v38, %v655_v37  ;;  %v661_v44 = vrot.slane %v1325_v39, 4  ;;  %v632_v45 = vmul.f32 %v628_v12, %v1325_v39 }
 0x4b7   :  { %v653_v50 = vmul.f32 %v649_v25, %v1330_v46  ;;  %v660_v52 = vrot.slane %v1330_v46, 4  ;;  %v631_v53 = vmul.f32 %v628_v12, %v1330_v46  ;;  %967 = vmatpush3.bf16.msra.mxu1 %v966_v33 }
 0x4b8   :  { %v687_v47 = vsel %vm154_vm1, %v679_v41, 0.0  ;;  %v665_v48 = vsel %vm483_vm12, %v661_v44, %v658_v31  ;;  %v641_v49 = vadd.f32 %v930_v29, %v632_v45  ;;  %v812_v31 = vld [vmem:[%s1408_s10 + $0x10] sm:$0xff]  ;;  %968 = vmatprep.subr.bf16.mxu1 %v1031_v32 }
 0x4b9   :  { %688 = vadd.xlane.f32.xlu1 %v687_v47  ;;  %v666_v22 = vsel %vm289_vm13, %v665_v48, 0.0  ;;  %v662_v55 = vsel %vm483_vm12, %v660_v52, %v661_v44  ;;  %v640_v56 = vadd.f32 %v930_v29, %v631_v53  ;;  %v663_v57 = vsel %vm483_vm12, %v659_v26, %v660_v52  ;;  %v932_v53 = vld [vmem:[%s1406_s8 + $0x2] ss:$0 sm:$0xff] }
 0x4ba   :  { %v674_v13 = vmul.f32 %v673_v30, %v666_v22  ;;  %v657_v43 = vadd.f32 %v653_v50, %v641_v49  ;;  %v677_v60 = vmul.f32 %v673_v30, %v662_v55  ;;  %v668_v9 = vsel %vm291_vm14, %v663_v57, 0.0  ;;  %v931_v50 = vld [vmem:[%s1405_s7 + $0x2] ss:$0 sm:$0xff] }
 0x4bb   :  { %v656_v62 = vadd.f32 %v650_v0, %v640_v56  ;;  %v676_v63 = vmul.f32 %v673_v30, %v668_v9  ;;  %v969_v35 = vpack.c.bf16 %v813_v20, %v812_v31  ;;  %v933_v55 = vld [vmem:[%s1407_s9 + $0x2] ss:$0 sm:$0xff]  ;;  %vm823_vm13 = vcmask 1041409   ;;  %s1034_s9 = smov [#allocation2]  }
 0x4bc   :  { %v678_v59 = vadd.f32 %v674_v13, %v654_v54  ;;  %v681_v4 = vadd.f32 %v677_v60, %v657_v43  ;;  %s905_s26 = sshll.u32 %s1034_s9, 4  ;;  %vm897_vm14 = vcmask 58368   ;;  %s906_s26 = int_to_ptr.vmem [resolvable:$true] %s905_s26 }
 0x4bd   :  { %v680_v5 = vadd.f32 %v676_v63, %v656_v62  ;;  %970 = vmatpush3.bf16.msra.mxu1 %v969_v35  ;;  %s1007_s27 = scalar_lea.vmem %s906_s26, 32  ;;  %p1012_p1 = scmp.lt.s32.totalorder %s906_s26, %s906_s26 }
 0x4be   :  { %v684_v3 = vsel %vm154_vm1, %v678_v59, 0.0  ;;  %v693_v6 = vsel %vm154_vm1, %v681_v4, 0.0  ;;  %p1008_p0 = scmp.ne.s32.totalorder %s906_s26, %s1007_s27  ;;  %p1013_p2 = scmp.lt.s32.totalorder %s1007_s27, %s1007_s27 }
 0x4bf   :  { %685 = vadd.xlane.f32.xlu0 %v684_v3  ;;  %694 = vadd.xlane.f32.xlu1 %v693_v6  ;;  %v690_v7 = vsel %vm154_vm1, %v680_v5, 0.0 }
 0x4c0   :  { %p1014_p3 = por %p1013_p2, %p1012_p1 }
 0x4c2   :  { %p1015_p4 = pnand %p1014_p3, %p1008_p0 }
 0x4c3   :  { %691 = vadd.xlane.f32.xlu0 %v690_v7 }
 0x546   :  { %v689_v51 = vpop.xlane.xlu1 %688 }
 0x547   :  { %v697_v8 = vmul.f32 0.03125, %v689_v51 }
 0x549   :  { %v701_v10 = vsub.f32 %v679_v41, %v697_v8 }
 0x54b   :  { %v705_v14 = vmul.f32 %v701_v10, %v701_v10 }
 0x54c   :  { %v686_v15 = vpop.xlane.xlu0 %685  ;;  %v695_v18 = vpop.xlane.xlu1 %694 }
 0x54d   :  { %v696_v1 = vmul.f32 0.03125, %v686_v15  ;;  %v711_v17 = vsel %vm154_vm1, %v705_v14, 0.0  ;;  %v699_v19 = vmul.f32 0.03125, %v695_v18 }
 0x54e   :  { %712 = vadd.xlane.f32.xlu1 %v711_v17 }
 0x54f   :  { %v700_v12 = vsub.f32 %v678_v59, %v696_v1  ;;  %v703_v23 = vsub.f32 %v681_v4, %v699_v19 }
 0x550   :  { %v692_v11 = vpop.xlane.xlu0 %691 }
 0x551   :  { %v698_v24 = vmul.f32 0.03125, %v692_v11  ;;  %v704_v25 = vmul.f32 %v700_v12, %v700_v12  ;;  %v707_v2 = vmul.f32 %v703_v23, %v703_v23 }
 0x553   :  { %v702_v21 = vsub.f32 %v680_v5, %v698_v24  ;;  %v708_v29 = vsel %vm154_vm1, %v704_v25, 0.0  ;;  %v717_v58 = vsel %vm154_vm1, %v707_v2, 0.0 }
 0x554   :  { %709 = vadd.xlane.f32.xlu0 %v708_v29  ;;  %718 = vadd.xlane.f32.xlu1 %v717_v58 }
 0x555   :  { %v706_v26 = vmul.f32 %v702_v21, %v702_v21 }
 0x557   :  { %v714_v30 = vsel %vm154_vm1, %v706_v26, 0.0 }
 0x558   :  { %715 = vadd.xlane.f32.xlu0 %v714_v30 }
 0x5db   :  { %v713_v36 = vpop.xlane.xlu1 %712 }
 0x5dc   :  { %v721_v37 = vmul.f32 0.03125, %v713_v36 }
 0x5de   :  { %v725_v38 = vadd.f32 1e-05, %v721_v37 }
 0x5e0   :  { %999 = vrsqrt.f32 %v725_v38 }
 0x5e1   :  { %v710_v0 = vpop.xlane.xlu0 %709  ;;  %v719_v41 = vpop.xlane.xlu1 %718 }
 0x5e2   :  { %v720_v40 = vmul.f32 0.03125, %v710_v0  ;;  %v723_v42 = vmul.f32 0.03125, %v719_v41 }
 0x5e4   :  { %v724_v44 = vadd.f32 1e-05, %v720_v40  ;;  %v727_v47 = vadd.f32 1e-05, %v723_v42 }
 0x5e5   :  { %v716_v45 = vpop.xlane.xlu0 %715 }
 0x5e6   :  { %1001 = vrsqrt.f32 %v724_v44  ;;  %v722_v48 = vmul.f32 0.03125, %v716_v45 }
 0x5e7   :  { %1003 = vrsqrt.f32 %v727_v47 }
 0x5e8   :  { %v726_v49 = vadd.f32 1e-05, %v722_v48 }
 0x5ea   :  { %v1000_v22 = vpop.eup %999  ;;  %1005 = vrsqrt.f32 %v726_v49 }
 0x5eb   :  { %v733_v52 = vmul.f32 %v1000_v22, %v701_v10  ;;  %v934_v22 = vld [vmem:[%s1409_s11] ss:$0 sm:$0xff] }
 0x5ed   :  { %v741_v54 = vmul.f32 %v931_v50, %v733_v52 }
 0x5ef   :  { %v749_v13 = vadd.f32 %v932_v53, %v741_v54 }
 0x5f0   :  { %v1002_v43 = vpop.eup %1001 }
 0x5f1   :  { %vm753_vm5 = vcmp.ge.f32.partialorder %v749_v13, 0.0  ;;  %v757_v56 = vmul.f32 0.01, %v749_v13  ;;  %v732_v57 = vmul.f32 %v1002_v43, %v700_v12  ;;  %v1004_v59 = vpop.eup %1003 }
 0x5f2   :  { %v735_v9 = vmul.f32 %v1004_v59, %v703_v23 }
 0x5f3   :  { %v761_v60 = vsel %vm753_vm5, %v749_v13, %v757_v56  ;;  %v740_v62 = vmul.f32 %v931_v50, %v732_v57 }
 0x5f4   :  { %v1006_v63 = vpop.eup %1005  ;;  %v770_v3 = vmul.f32 %v933_v55, %v761_v60  ;;  %v743_v4 = vmul.f32 %v931_v50, %v735_v9 }
 0x5f5   :  { %v748_v5 = vadd.f32 %v932_v53, %v740_v62  ;;  %v734_v6 = vmul.f32 %v1006_v63, %v702_v21 }
 0x5f6   :  { %v774_v7 = vadd.f32 %v770_v3, %v1308_v27  ;;  %v751_v51 = vadd.f32 %v932_v53, %v743_v4 }
 0x5f7   :  { %vm752_vm6 = vcmp.ge.f32.partialorder %v748_v5, 0.0  ;;  %v756_v8 = vmul.f32 0.01, %v748_v5  ;;  %v742_v10 = vmul.f32 %v931_v50, %v734_v6 }
 0x5f8   :  { %v782_v14 = vmul.f32 0.01, %v774_v7  ;;  %vm755_vm7 = vcmp.ge.f32.partialorder %v751_v51, 0.0  ;;  %v759_v15 = vmul.f32 0.01, %v751_v51  ;;  %vm778_vm8 = vcmp.ge.f32.partialorder %v774_v7, 0.0 }
 0x5f9   :  { %v760_v1 = vsel %vm752_vm6, %v748_v5, %v756_v8  ;;  %v750_v17 = vadd.f32 %v932_v53, %v742_v10 }
 0x5fa   :  { %v769_v18 = vmul.f32 %v933_v55, %v760_v1  ;;  %v763_v19 = vsel %vm755_vm7, %v751_v51, %v759_v15  ;;  %v786_v25 = vsel %vm778_vm8, %v774_v7, %v782_v14 }
 0x5fb   :  { %vm754_vm9 = vcmp.ge.f32.partialorder %v750_v17, 0.0  ;;  %v758_v12 = vmul.f32 0.01, %v750_v17  ;;  %v772_v11 = vmul.f32 %v933_v55, %v763_v19  ;;  %v790_v61 = vsel %vm154_vm1, %v786_v25, 0.0 }
 0x5fc   :  { %v773_v23 = vadd.f32 %v769_v18, %v1311_v28 }
 0x5fd   :  { %v762_v24 = vsel %vm754_vm9, %v750_v17, %v758_v12  ;;  %v776_v21 = vadd.f32 %v772_v11, %v1325_v39 }
 0x5fe   :  { %v771_v27 = vmul.f32 %v933_v55, %v762_v24  ;;  %vm777_vm10 = vcmp.ge.f32.partialorder %v773_v23, 0.0  ;;  %v781_v2 = vmul.f32 0.01, %v773_v23 }
 0x5ff   :  { %vm780_vm11 = vcmp.ge.f32.partialorder %v776_v21, 0.0  ;;  %v784_v58 = vmul.f32 0.01, %v776_v21 }
 0x600   :  { %v775_v29 = vadd.f32 %v771_v27, %v1330_v46  ;;  %v785_v26 = vsel %vm777_vm10, %v773_v23, %v781_v2 }
 0x601   :  { %v789_v30 = vsel %vm154_vm1, %v785_v26, 0.0  ;;  %v788_v31 = vsel %vm780_vm11, %v776_v21, %v784_v58 }
 0x602   :  { %vm779_vm12 = vcmp.ge.f32.partialorder %v775_v29, 0.0  ;;  %v783_v16 = vmul.f32 0.01, %v775_v29  ;;  %v791_v28 = vadd.f32 %v790_v61, %v789_v30  ;;  %v799_v39 = vsel %vm154_vm1, %v788_v31, 0.0 }
 0x604   :  { %v787_v32 = vsel %vm779_vm12, %v775_v29, %v783_v16  ;;  %v792_v33 = vrot.slane %v791_v28, 4 }
 0x605   :  { %v798_v20 = vsel %vm154_vm1, %v787_v32, 0.0 }
 0x606   :  { %v793_v34 = vadd.f32 %v792_v33, %v791_v28  ;;  %v800_v35 = vadd.f32 %v799_v39, %v798_v20 }
 0x608   :  { %v794_v46 = vrot.slane %v793_v34, 2  ;;  %v801_v36 = vrot.slane %v800_v35, 4 }
 0x60a   :  { %v795_v37 = vadd.f32 %v794_v46, %v793_v34  ;;  %v802_v38 = vadd.f32 %v801_v36, %v800_v35 }
 0x60c   :  { %v796_v0 = vrot.slane %v795_v37, 1  ;;  %v803_v40 = vrot.slane %v802_v38, 2 }
 0x60e   :  { %v804_v41 = vadd.f32 %v803_v40, %v802_v38  ;;  %v797_v42 = vadd.f32 %v796_v0, %v795_v37 }
 0x610   :  { %v805_v44 = vrot.slane %v804_v41, 1  ;;  %v808_v47 = vmul.f32 0.0625, %v797_v42 }
 0x612   :  { %v806_v45 = vadd.f32 %v805_v44, %v804_v41 }
 0x614   :  { %v809_v48 = vmul.f32 0.0625, %v806_v45 }
 0x616   :  { %v824_v49 = vsel %vm823_vm13, %v809_v48, %v808_v47 }
 0x617   :  { %963 = vmatmul.mubr.msk.f32.vlgmr.msra.gmra.mrb[0].mxu1 %vm154_vm1, %v824_v49 }
 0x6ea   :  { %v893_v50 = vpop.f32.mrb[0].mxu1 }
 0x6eb   :  { %v894_v52 = vadd.f32 %v934_v22, %v893_v50  ;;  %v964_v53 = vpop.f32.mrb[1].mxu1 }
 0x6ed   :  { %898 = vst.msk [vmem:[#allocation2] sm:$0x3] %vm897_vm14, %v894_v52 }
 0x6ee   :  { %1018 = shalt.err (!%p1015_p4)
}
 0x6ef   :  { %s1019_s29 = scalar_lea.hbm %s1410_s12, 32 }
 0x6f0   :  { %p1020_p5 = scmp.ne.s32.totalorder %s1410_s12, %s1019_s29  ;;  %p1023_p6 = scmp.lt.u32.totalorder %s1019_s29, %s1410_s12 }
 0x6f2   :  { %p1025_p7 = pnand %p1023_p6, %p1020_p5 }
 0x6f4   :  { %1028 = shalt.err (!%p1025_p7)
}
 0x6f5   :  { %908 = dma.vmem_to_hbm [thread:$0]  %s906_s26, 32, %s1410_s12, [#allocation3]  }
 0x6f6   :  { %1029 = dma.done.wait [#allocation3], 32  }
 0x6f7   :  { %1030 = vsyncadd [#allocation3], 4294967264 }
 0x6f8   :  { %912 = vsyncpa [#allocation3], 1 }

</bundles_post_ra>
